<compile_context>
chip_gen: v5e
topology: v5e:2x2
jax: 0.10.0
libtpu: 0.0.40
codegen_flags: <defaults>
</compile_context>

<pallas_src>
import functools

import jax
import jax.numpy as jnp
from jax import lax
from jax.experimental import pallas as pl
from jax.experimental.pallas import tpu as pltpu

EPS = 1e-5          # nn.InstanceNorm2d default eps
STYLE_DIM = 512     # nn.Linear(512, channel)


def _inorm(x):
    """Per-(sample, channel) instance norm over the last (spatial) axis.

    Single-pass sum / sum-of-squares (biased variance, matching InstanceNorm2d).
    """
    n = x.shape[-1]
    s = jnp.sum(x, axis=-1, keepdims=True)
    ss = jnp.sum(x * x, axis=-1, keepdims=True)
    mean = s * (1.0 / n)
    var = ss * (1.0 / n) - mean * mean
    return (x - mean) * lax.rsqrt(var + EPS)


def preprocess_kernel(x_ref, sp_ref, cw_ref, mask_ref, o_ref, *, W):
    B, C, HW = x_ref.shape

    x = x_ref[...]                       # (B, C, HW) f32
    sp = sp_ref[...]                     # (C, 4): columns = [s1, b1, s2, b2]
    s1 = sp[:, 0:1][None]                # (1, C, 1)
    b1 = sp[:, 1:2][None]
    s2 = sp[:, 2:3][None]
    b2 = sp[:, 3:4][None]

    # AdaIn 1: InstanceNorm + per-channel scale/shift.
    x = _inorm(x) * s1 + b1              # (B, C, HW)

    # Conv2d(C, C, 3, padding=1): 9 lane-rolls (XLU) + boundary masks (VPU)
    # build an im2col block; one fused (C, 9C)x(9C, HW) MXU matmul per sample.
    x2 = x.reshape(B * C, HW)
    masks = mask_ref[...]                # (9, HW) 0/1 f32
    taps = []
    for k in range(9):
        dy, dx = k // 3 - 1, k % 3 - 1
        off = dy * W + dx                # output p reads input p + off (0 outside)
        if off == 0:
            taps.append(x)               # identity tap, mask is all-ones
        else:
            rolled = pltpu.roll(x2, shift=(-off) % HW, axis=1)
            taps.append((rolled * masks[k:k + 1, :]).reshape(B, C, HW))
    x9 = jnp.concatenate(taps, axis=1)   # (B, 9C, HW), index = k*C + c_in

    cw = cw_ref[...]                     # (C, 9C), same k*C + c_in ordering
    conv = jnp.stack(
        [jnp.dot(cw, x9[b], preferred_element_type=jnp.float32) for b in range(B)],
        axis=0)                          # (B, C, HW)
    # Conv bias omitted: cancelled exactly by the InstanceNorm below.

    # MyConv2d tail: InstanceNorm + ReLU; then AdaIn 2.
    y = jnp.maximum(_inorm(conv), 0.0)
    y = _inorm(y) * s2 + b2
    o_ref[...] = y.astype(o_ref.dtype)


def make_tap_masks(H, W):
    """(9, HW) 0/1 masks: mask[k, p]=1 iff input position p+off_k is in-bounds."""
    HW = H * W
    q = jnp.arange(HW)
    qh, qw = q // W, q % W
    ms = []
    for k in range(9):
        dy, dx = k // 3 - 1, k % 3 - 1
        valid = (qh + dy >= 0) & (qh + dy < H) & (qw + dx >= 0) & (qw + dx < W)
        ms.append(valid.astype(jnp.float32))
    return jnp.stack(ms, axis=0)


def _pick_block_b(N, max_bb=8):
    """Largest divisor of N (<= max_bb) that still leaves >= 2 grid steps."""
    if N <= 1:
        return 1
    best = 1
    for b in range(1, min(N, max_bb) + 1):
        if N % b == 0 and N // b >= 2:
            best = b
    return best


def preprocess_pallas(mat, style, params, *, block_b=None):
    N, C, H, W = mat.shape
    HW = H * W
    mat2 = mat.reshape(N, C, HW).astype(jnp.float32)
    style2 = style.reshape(1, STYLE_DIM).astype(jnp.float32)

    # Hoisted grid-invariant style linears (done once, in plain XLA).
    def lin(w, b):
        return (style2 @ w.T + b[None, :]).reshape(C, 1)   # (C, 1)

    sp = jnp.concatenate(
        [lin(params["w1s"], params["b1s"]),
         lin(params["w1b"], params["b1b"]),
         lin(params["w2s"], params["b2s"]),
         lin(params["w2b"], params["b2b"])], axis=1)        # (C, 4)

    # Conv weights in tap-major (k*C + c_in) layout: (C, 9C).
    cw = jnp.transpose(params["conv_w"], (0, 2, 3, 1)).reshape(C, 9 * C)
    masks = make_tap_masks(H, W)                            # (9, HW)

    bb = _pick_block_b(N) if block_b is None else block_b
    assert N % bb == 0, "block_b must divide N"

    kernel = functools.partial(preprocess_kernel, W=W)

    in_specs = [
        pl.BlockSpec((bb, C, HW), lambda n: (n, 0, 0)),     # input batch block
        pl.BlockSpec((C, 4), lambda n: (0, 0)),             # style columns
        pl.BlockSpec((C, 9 * C), lambda n: (0, 0)),         # fused conv weights
        pl.BlockSpec((9, HW), lambda n: (0, 0)),            # boundary masks
    ]
    out_specs = pl.BlockSpec((bb, C, HW), lambda n: (n, 0, 0))

    out = pl.pallas_call(
        kernel,
        out_shape=jax.ShapeDtypeStruct((N, C, HW), jnp.float32),
        grid_spec=pltpu.PrefetchScalarGridSpec(
            num_scalar_prefetch=0,
            grid=(N // bb,),
            in_specs=in_specs,
            out_specs=out_specs,
        ),
        compiler_params=pltpu.CompilerParams(
            dimension_semantics=("parallel",)),
    )(mat2, sp, cw, masks)
    return out.reshape(N, C, H, W)


def preprocess_ref(mat, style, params):
    # Pure-JAX reference mirroring the PyTorch forward (NCHW, incl. conv bias).
    C = mat.shape[1]

    def inorm(x):
        mean = jnp.mean(x, axis=(2, 3), keepdims=True)
        var = jnp.mean((x - mean) ** 2, axis=(2, 3), keepdims=True)
        return (x - mean) * lax.rsqrt(var + EPS)

    def lin(w, b):
        return style @ w.T + b  # (1, C)

    rs = lambda v: v.reshape(1, C, 1, 1)
    s1, b1 = lin(params["w1s"], params["b1s"]), lin(params["w1b"], params["b1b"])
    s2, b2 = lin(params["w2s"], params["b2s"]), lin(params["w2b"], params["b2b"])

    x = inorm(mat) * rs(s1) + rs(b1)
    x = lax.conv_general_dilated(x, params["conv_w"], (1, 1), ((1, 1), (1, 1)),
                                 dimension_numbers=("NCHW", "OIHW", "NCHW"))
    x = x + params["conv_b"].reshape(1, C, 1, 1)
    x = jnp.maximum(inorm(x), 0.0)
    x = inorm(x) * rs(s2) + rs(b2)
    return x


if __name__ == "__main__":
    N, C, H, W = 2, 8, 16, 16
    key = jax.random.PRNGKey(0)
    ks = jax.random.split(key, 12)
    params = {
        "w1s": jax.random.normal(ks[0], (C, STYLE_DIM), jnp.float32) * 0.05,
        "b1s": jax.random.normal(ks[1], (C,), jnp.float32) * 0.1,
        "w1b": jax.random.normal(ks[2], (C, STYLE_DIM), jnp.float32) * 0.05,
        "b1b": jax.random.normal(ks[3], (C,), jnp.float32) * 0.1,
        "w2s": jax.random.normal(ks[4], (C, STYLE_DIM), jnp.float32) * 0.05,
        "b2s": jax.random.normal(ks[5], (C,), jnp.float32) * 0.1,
        "w2b": jax.random.normal(ks[6], (C, STYLE_DIM), jnp.float32) * 0.05,
        "b2b": jax.random.normal(ks[7], (C,), jnp.float32) * 0.1,
        "conv_w": jax.random.normal(ks[8], (C, C, 3, 3), jnp.float32) * 0.2,
        "conv_b": jax.random.normal(ks[9], (C,), jnp.float32) * 0.1,
    }
    mat = jax.random.normal(ks[10], (N, C, H, W), jnp.float32)
    style = jax.random.normal(ks[11], (1, STYLE_DIM), jnp.float32)

    out = preprocess_pallas(mat, style, params)
    out = jax.block_until_ready(out)

    ref = preprocess_ref(mat, style, params)
    assert out.shape == (N, C, H, W)
    max_err = float(jnp.max(jnp.abs(out - ref)))
    if max_err > 5e-3:
        raise AssertionError(f"mismatch vs reference: max_err={max_err}")
    print("KERNEL_OK")
</pallas_src>

<mosaic_0001>
module attributes {stable_mosaic.version = 11 : i64} {
  func.func @preprocess_kernel(%arg0: i32, %arg1: memref<1x8x256xf32, #tpu.memory_space<vmem>>, %arg2: memref<8x4xf32, #tpu.memory_space<vmem>>, %arg3: memref<8x72xf32, #tpu.memory_space<vmem>>, %arg4: memref<9x256xf32, #tpu.memory_space<vmem>>, %arg5: memref<1x8x256xf32, #tpu.memory_space<vmem>>) attributes {dimension_semantics = [#tpu.dimension_semantics<parallel>], iteration_bounds = array<i64: 2>, scalar_prefetch = 0 : i64, scratch_operands = 0 : i64, tpu.core_type = #tpu.core_type<tc>, window_params = [{transform_indices = @transform_0, window_bounds = array<i64: 1, 8, 256>}, {pipeline_mode = #tpu.pipeline_mode<synchronous>, transform_indices = @transform_1, window_bounds = array<i64: 8, 4>}, {pipeline_mode = #tpu.pipeline_mode<synchronous>, transform_indices = @transform_2, window_bounds = array<i64: 8, 72>}, {pipeline_mode = #tpu.pipeline_mode<synchronous>, transform_indices = @transform_3, window_bounds = array<i64: 9, 256>}, {transform_indices = @transform_4, window_bounds = array<i64: 1, 8, 256>}]} {
    %c0 = arith.constant 0 : index
    %c0_0 = arith.constant 0 : index
    %c0_1 = arith.constant 0 : index
    %0 = vector.load %arg1[%c0, %c0_0, %c0_1] : memref<1x8x256xf32, #tpu.memory_space<vmem>>, vector<1x8x256xf32>
    %c0_2 = arith.constant 0 : index
    %c0_3 = arith.constant 0 : index
    %1 = vector.load %arg2[%c0_2, %c0_3] : memref<8x4xf32, #tpu.memory_space<vmem>>, vector<8x4xf32>
    %2 = vector.extract_strided_slice %1 {offsets = [0, 0], sizes = [8, 1], strides = [1, 1]} : vector<8x4xf32> to vector<8x1xf32>
    %3 = vector.shape_cast %2 : vector<8x1xf32> to vector<1x8x1xf32>
    %4 = vector.extract_strided_slice %1 {offsets = [0, 1], sizes = [8, 1], strides = [1, 1]} : vector<8x4xf32> to vector<8x1xf32>
    %5 = vector.shape_cast %4 : vector<8x1xf32> to vector<1x8x1xf32>
    %6 = vector.extract_strided_slice %1 {offsets = [0, 2], sizes = [8, 1], strides = [1, 1]} : vector<8x4xf32> to vector<8x1xf32>
    %7 = vector.shape_cast %6 : vector<8x1xf32> to vector<1x8x1xf32>
    %8 = vector.extract_strided_slice %1 {offsets = [0, 3], sizes = [8, 1], strides = [1, 1]} : vector<8x4xf32> to vector<8x1xf32>
    %9 = vector.shape_cast %8 : vector<8x1xf32> to vector<1x8x1xf32>
    %cst = arith.constant dense<0.000000e+00> : vector<1x8xf32>
    %10 = vector.multi_reduction <add>, %0, %cst [2] : vector<1x8x256xf32> to vector<1x8xf32>
    %11 = vector.shape_cast %10 : vector<1x8xf32> to vector<1x8x1xf32>
    %12 = arith.mulf %0, %0 : vector<1x8x256xf32>
    %cst_4 = arith.constant dense<0.000000e+00> : vector<1x8xf32>
    %13 = vector.multi_reduction <add>, %12, %cst_4 [2] : vector<1x8x256xf32> to vector<1x8xf32>
    %14 = vector.shape_cast %13 : vector<1x8xf32> to vector<1x8x1xf32>
    %cst_5 = arith.constant 3.906250e-03 : f32
    %15 = vector.broadcast %cst_5 : f32 to vector<1x8x1xf32>
    %16 = arith.mulf %11, %15 : vector<1x8x1xf32>
    %cst_6 = arith.constant 3.906250e-03 : f32
    %17 = vector.broadcast %cst_6 : f32 to vector<1x8x1xf32>
    %18 = arith.mulf %14, %17 : vector<1x8x1xf32>
    %19 = arith.mulf %16, %16 : vector<1x8x1xf32>
    %20 = arith.subf %18, %19 : vector<1x8x1xf32>
    %21 = vector.broadcast %16 : vector<1x8x1xf32> to vector<1x8x256xf32>
    %22 = arith.subf %0, %21 : vector<1x8x256xf32>
    %cst_7 = arith.constant 9.99999974E-6 : f32
    %23 = vector.broadcast %cst_7 : f32 to vector<1x8x1xf32>
    %24 = arith.addf %20, %23 : vector<1x8x1xf32>
    %25 = math.rsqrt %24 : vector<1x8x1xf32>
    %26 = vector.broadcast %25 : vector<1x8x1xf32> to vector<1x8x256xf32>
    %27 = arith.mulf %22, %26 : vector<1x8x256xf32>
    %28 = vector.broadcast %3 : vector<1x8x1xf32> to vector<1x8x256xf32>
    %29 = arith.mulf %27, %28 : vector<1x8x256xf32>
    %30 = vector.broadcast %5 : vector<1x8x1xf32> to vector<1x8x256xf32>
    %31 = arith.addf %29, %30 : vector<1x8x256xf32>
    %32 = vector.shape_cast %31 : vector<1x8x256xf32> to vector<8x256xf32>
    %c0_8 = arith.constant 0 : index
    %c0_9 = arith.constant 0 : index
    %33 = vector.load %arg4[%c0_8, %c0_9] : memref<9x256xf32, #tpu.memory_space<vmem>>, vector<9x256xf32>
    %c17_i32 = arith.constant 17 : i32
    %34 = tpu.dynamic_rotate %32 by %c17_i32 dim 1 : vector<8x256xf32>, i32 -> vector<8x256xf32>
    %35 = vector.extract_strided_slice %33 {offsets = [0, 0], sizes = [1, 256], strides = [1, 1]} : vector<9x256xf32> to vector<1x256xf32>
    %36 = vector.broadcast %35 : vector<1x256xf32> to vector<8x256xf32>
    %37 = arith.mulf %34, %36 : vector<8x256xf32>
    %38 = vector.shape_cast %37 : vector<8x256xf32> to vector<1x8x256xf32>
    %c16_i32 = arith.constant 16 : i32
    %39 = tpu.dynamic_rotate %32 by %c16_i32 dim 1 : vector<8x256xf32>, i32 -> vector<8x256xf32>
    %40 = vector.extract_strided_slice %33 {offsets = [1, 0], sizes = [1, 256], strides = [1, 1]} : vector<9x256xf32> to vector<1x256xf32>
    %41 = vector.broadcast %40 : vector<1x256xf32> to vector<8x256xf32>
    %42 = arith.mulf %39, %41 : vector<8x256xf32>
    %43 = vector.shape_cast %42 : vector<8x256xf32> to vector<1x8x256xf32>
    %c15_i32 = arith.constant 15 : i32
    %44 = tpu.dynamic_rotate %32 by %c15_i32 dim 1 : vector<8x256xf32>, i32 -> vector<8x256xf32>
    %45 = vector.extract_strided_slice %33 {offsets = [2, 0], sizes = [1, 256], strides = [1, 1]} : vector<9x256xf32> to vector<1x256xf32>
    %46 = vector.broadcast %45 : vector<1x256xf32> to vector<8x256xf32>
    %47 = arith.mulf %44, %46 : vector<8x256xf32>
    %48 = vector.shape_cast %47 : vector<8x256xf32> to vector<1x8x256xf32>
    %c1_i32 = arith.constant 1 : i32
    %49 = tpu.dynamic_rotate %32 by %c1_i32 dim 1 : vector<8x256xf32>, i32 -> vector<8x256xf32>
    %50 = vector.extract_strided_slice %33 {offsets = [3, 0], sizes = [1, 256], strides = [1, 1]} : vector<9x256xf32> to vector<1x256xf32>
    %51 = vector.broadcast %50 : vector<1x256xf32> to vector<8x256xf32>
    %52 = arith.mulf %49, %51 : vector<8x256xf32>
    %53 = vector.shape_cast %52 : vector<8x256xf32> to vector<1x8x256xf32>
    %c255_i32 = arith.constant 255 : i32
    %54 = tpu.dynamic_rotate %32 by %c255_i32 dim 1 : vector<8x256xf32>, i32 -> vector<8x256xf32>
    %55 = vector.extract_strided_slice %33 {offsets = [5, 0], sizes = [1, 256], strides = [1, 1]} : vector<9x256xf32> to vector<1x256xf32>
    %56 = vector.broadcast %55 : vector<1x256xf32> to vector<8x256xf32>
    %57 = arith.mulf %54, %56 : vector<8x256xf32>
    %58 = vector.shape_cast %57 : vector<8x256xf32> to vector<1x8x256xf32>
    %c241_i32 = arith.constant 241 : i32
    %59 = tpu.dynamic_rotate %32 by %c241_i32 dim 1 : vector<8x256xf32>, i32 -> vector<8x256xf32>
    %60 = vector.extract_strided_slice %33 {offsets = [6, 0], sizes = [1, 256], strides = [1, 1]} : vector<9x256xf32> to vector<1x256xf32>
    %61 = vector.broadcast %60 : vector<1x256xf32> to vector<8x256xf32>
    %62 = arith.mulf %59, %61 : vector<8x256xf32>
    %63 = vector.shape_cast %62 : vector<8x256xf32> to vector<1x8x256xf32>
    %c240_i32 = arith.constant 240 : i32
    %64 = tpu.dynamic_rotate %32 by %c240_i32 dim 1 : vector<8x256xf32>, i32 -> vector<8x256xf32>
    %65 = vector.extract_strided_slice %33 {offsets = [7, 0], sizes = [1, 256], strides = [1, 1]} : vector<9x256xf32> to vector<1x256xf32>
    %66 = vector.broadcast %65 : vector<1x256xf32> to vector<8x256xf32>
    %67 = arith.mulf %64, %66 : vector<8x256xf32>
    %68 = vector.shape_cast %67 : vector<8x256xf32> to vector<1x8x256xf32>
    %c239_i32 = arith.constant 239 : i32
    %69 = tpu.dynamic_rotate %32 by %c239_i32 dim 1 : vector<8x256xf32>, i32 -> vector<8x256xf32>
    %70 = vector.extract_strided_slice %33 {offsets = [8, 0], sizes = [1, 256], strides = [1, 1]} : vector<9x256xf32> to vector<1x256xf32>
    %71 = vector.broadcast %70 : vector<1x256xf32> to vector<8x256xf32>
    %72 = arith.mulf %69, %71 : vector<8x256xf32>
    %73 = vector.shape_cast %72 : vector<8x256xf32> to vector<1x8x256xf32>
    %74 = tpu.concatenate %38, %43, %48, %53, %31, %58, %63, %68, %73 in 1 : vector<1x8x256xf32>, vector<1x8x256xf32>, vector<1x8x256xf32>, vector<1x8x256xf32>, vector<1x8x256xf32>, vector<1x8x256xf32>, vector<1x8x256xf32>, vector<1x8x256xf32>, vector<1x8x256xf32> -> vector<1x72x256xf32>
    %c0_10 = arith.constant 0 : index
    %c0_11 = arith.constant 0 : index
    %75 = vector.load %arg3[%c0_10, %c0_11] : memref<8x72xf32, #tpu.memory_space<vmem>>, vector<8x72xf32>
    %76 = vector.shape_cast %74 : vector<1x72x256xf32> to vector<72x256xf32>
    %cst_12 = arith.constant dense<0.000000e+00> : vector<8x256xf32>
    %77 = tpu.matmul %75, %76, %cst_12 {dimension_numbers = #tpu.dot_dimension_numbers<[1], [0], [0], [1], [0, 0, 1, 1], [], []>} : vector<8x72xf32>, vector<72x256xf32>, vector<8x256xf32> -> vector<8x256xf32>
    %78 = vector.shape_cast %77 : vector<8x256xf32> to vector<1x8x256xf32>
    %cst_13 = arith.constant dense<0.000000e+00> : vector<1x8xf32>
    %79 = vector.multi_reduction <add>, %78, %cst_13 [2] : vector<1x8x256xf32> to vector<1x8xf32>
    %80 = vector.shape_cast %79 : vector<1x8xf32> to vector<1x8x1xf32>
    %81 = arith.mulf %78, %78 : vector<1x8x256xf32>
    %cst_14 = arith.constant dense<0.000000e+00> : vector<1x8xf32>
    %82 = vector.multi_reduction <add>, %81, %cst_14 [2] : vector<1x8x256xf32> to vector<1x8xf32>
    %83 = vector.shape_cast %82 : vector<1x8xf32> to vector<1x8x1xf32>
    %cst_15 = arith.constant 3.906250e-03 : f32
    %84 = vector.broadcast %cst_15 : f32 to vector<1x8x1xf32>
    %85 = arith.mulf %80, %84 : vector<1x8x1xf32>
    %cst_16 = arith.constant 3.906250e-03 : f32
    %86 = vector.broadcast %cst_16 : f32 to vector<1x8x1xf32>
    %87 = arith.mulf %83, %86 : vector<1x8x1xf32>
    %88 = arith.mulf %85, %85 : vector<1x8x1xf32>
    %89 = arith.subf %87, %88 : vector<1x8x1xf32>
    %90 = vector.broadcast %85 : vector<1x8x1xf32> to vector<1x8x256xf32>
    %91 = arith.subf %78, %90 : vector<1x8x256xf32>
    %cst_17 = arith.constant 9.99999974E-6 : f32
    %92 = vector.broadcast %cst_17 : f32 to vector<1x8x1xf32>
    %93 = arith.addf %89, %92 : vector<1x8x1xf32>
    %94 = math.rsqrt %93 : vector<1x8x1xf32>
    %95 = vector.broadcast %94 : vector<1x8x1xf32> to vector<1x8x256xf32>
    %96 = arith.mulf %91, %95 : vector<1x8x256xf32>
    %cst_18 = arith.constant 0.000000e+00 : f32
    %97 = vector.broadcast %cst_18 : f32 to vector<1x8x256xf32>
    %98 = arith.maximumf %96, %97 : vector<1x8x256xf32>
    %cst_19 = arith.constant dense<0.000000e+00> : vector<1x8xf32>
    %99 = vector.multi_reduction <add>, %98, %cst_19 [2] : vector<1x8x256xf32> to vector<1x8xf32>
    %100 = vector.shape_cast %99 : vector<1x8xf32> to vector<1x8x1xf32>
    %101 = arith.mulf %98, %98 : vector<1x8x256xf32>
    %cst_20 = arith.constant dense<0.000000e+00> : vector<1x8xf32>
    %102 = vector.multi_reduction <add>, %101, %cst_20 [2] : vector<1x8x256xf32> to vector<1x8xf32>
    %103 = vector.shape_cast %102 : vector<1x8xf32> to vector<1x8x1xf32>
    %cst_21 = arith.constant 3.906250e-03 : f32
    %104 = vector.broadcast %cst_21 : f32 to vector<1x8x1xf32>
    %105 = arith.mulf %100, %104 : vector<1x8x1xf32>
    %cst_22 = arith.constant 3.906250e-03 : f32
    %106 = vector.broadcast %cst_22 : f32 to vector<1x8x1xf32>
    %107 = arith.mulf %103, %106 : vector<1x8x1xf32>
    %108 = arith.mulf %105, %105 : vector<1x8x1xf32>
    %109 = arith.subf %107, %108 : vector<1x8x1xf32>
    %110 = vector.broadcast %105 : vector<1x8x1xf32> to vector<1x8x256xf32>
    %111 = arith.subf %98, %110 : vector<1x8x256xf32>
    %cst_23 = arith.constant 9.99999974E-6 : f32
    %112 = vector.broadcast %cst_23 : f32 to vector<1x8x1xf32>
    %113 = arith.addf %109, %112 : vector<1x8x1xf32>
    %114 = math.rsqrt %113 : vector<1x8x1xf32>
    %115 = vector.broadcast %114 : vector<1x8x1xf32> to vector<1x8x256xf32>
    %116 = arith.mulf %111, %115 : vector<1x8x256xf32>
    %117 = vector.broadcast %7 : vector<1x8x1xf32> to vector<1x8x256xf32>
    %118 = arith.mulf %116, %117 : vector<1x8x256xf32>
    %119 = vector.broadcast %9 : vector<1x8x1xf32> to vector<1x8x256xf32>
    %120 = arith.addf %118, %119 : vector<1x8x256xf32>
    %c0_24 = arith.constant 0 : index
    %c0_25 = arith.constant 0 : index
    %c0_26 = arith.constant 0 : index
    %121 = vector.load %arg5[%c0_24, %c0_25, %c0_26] : memref<1x8x256xf32, #tpu.memory_space<vmem>>, vector<1x8x256xf32>
    tpu.vector_store %arg5[%c0_24, %c0_25, %c0_26], %120 {strides = array<i32>} : memref<1x8x256xf32, #tpu.memory_space<vmem>>, vector<1x8x256xf32>,
    return
  }
  func.func @transform_0(%arg0: i32) -> (i32, i32, i32) {
    %c0_i32 = arith.constant 0 : i32
    %c0_i32_0 = arith.constant 0 : i32
    %c0_i32_1 = arith.constant 0 : i32
    return %arg0, %c0_i32, %c0_i32_0 : i32, i32, i32
  }
  func.func @transform_1(%arg0: i32) -> (i32, i32) {
    %c0_i32 = arith.constant 0 : i32
    %c0_i32_0 = arith.constant 0 : i32
    %c0_i32_1 = arith.constant 0 : i32
    return %c0_i32, %c0_i32_0 : i32, i32
  }
  func.func @transform_2(%arg0: i32) -> (i32, i32) {
    %c0_i32 = arith.constant 0 : i32
    %c0_i32_0 = arith.constant 0 : i32
    %c0_i32_1 = arith.constant 0 : i32
    return %c0_i32, %c0_i32_0 : i32, i32
  }
  func.func @transform_3(%arg0: i32) -> (i32, i32) {
    %c0_i32 = arith.constant 0 : i32
    %c0_i32_0 = arith.constant 0 : i32
    %c0_i32_1 = arith.constant 0 : i32
    return %c0_i32, %c0_i32_0 : i32, i32
  }
  func.func @transform_4(%arg0: i32) -> (i32, i32, i32) {
    %c0_i32 = arith.constant 0 : i32
    %c0_i32_0 = arith.constant 0 : i32
    %c0_i32_1 = arith.constant 0 : i32
    return %arg0, %c0_i32, %c0_i32_0 : i32, i32, i32
  }
}

</mosaic_0001>

<bundles_post_ra>
// kernel: tpu_custom_call.1
= control target key start
LH: loop header
LB: loop body
LE: loop exit
PB: predicated region body
PF: predicated region fallthrough
CT: control target
= control target key end

     0   :  { %9 = vsyncpa [#allocation3], 0  ;;  %s1059_s0 = inlined_call_operand.hbm [shape: f32[2,8,256], index: 0, kind: input, shape index: {}]   ;;  %s1060_s1 = inlined_call_operand.vmem [shape: f32[8,4], index: 1, kind: input, shape index: {}]   ;;  %s1061_s2 = inlined_call_operand.vmem [shape: f32[8,72], index: 2, kind: input, shape index: {}]   ;;  %s1062_s3 = inlined_call_operand.hbm [shape: f32[9,256], index: 3, kind: input, shape index: {}]   ;;  %s1063_s4 = inlined_call_operand.hbm [shape: f32[2,8,256], index: 4, kind: output, shape index: {}]  }
   0x1   :  { %11 = vsyncpa [#allocation3 + $0x1], 0 }
   0x2   :  { %12 = vsyncpa [#allocation6], 0 }
   0x3   :  { %13 = vsyncpa [#allocation4], 0 }
   0x4   :  { %15 = vsyncpa [#allocation4 + $0x1], 0  ;;  %s857_s15 = smov 0   ;;  %s859_s16 = smov 0  }
   0x5   :  { %s861_s17 = smov 0   ;;  %s863_s18 = smov 0  }
   0x6 LB: > { %s158_s21 = sshll.u32 %s1062_s3, 4  ;;  %s881_s22 = sadd.s32 4294967295, %s815_s18   ;;  %s815_s18 = sphi %s863_s18, %s1073_s18   ;;  %s811_s17 = sphi %s861_s17, %s1072_s17   ;;  %s807_s16 = sphi %s859_s16, %s1071_s16   ;;  %s803_s15 = sphi %s857_s15, %s1070_s15   ;;  %s159_s21 = int_to_ptr.hbm [resolvable:$true] %s158_s21 }
   0x7   : > { %p583_p0 = scmp.ge.s32.totalorder %s815_s18, 1  ;;  %p42_p1 = scmp.eq.s32.totalorder %s881_s22, 0 }
   0x8   : > { %p141_p2 = scmp.lt.s32.totalorder %s815_s18, 3  ;;  %s817_s24 = smov [#allocation5]  }
   0x9   : > { %s160_s25 = sshll.u32 %s817_s24, 4  ;;  %s818_s26 = smov 256   ;;  %s161_s25 = int_to_ptr.vmem [resolvable:$true] %s160_s25 }
   0xa   : > { %p886_p3 = pnand %p583_p0, %p141_p2  ;;  %s819_s27 = smov 16  }
   0xb   : > { %s582_s28 = sadd.s32 4294967294, %s815_s18   ;;  %s897_s29 = sadd.s32 1, %s815_s18  }
   0xc   : > { %p610_p4 = pneg %p886_p3  ;;  %s28_s30 = sadd.s32 1, %s811_s17 }
   0xd   : > { %s25_s5 = ssub.s32 %s815_s18, %s897_s29  ;;  %p35_p7 = scmp.ne.s32.totalorder %s811_s17, %s807_s16 }
   0xe   : > { %p611_p6 = pnand %p610_p4, %p42_p1  ;;  %p26_p8 = scmp.eq.s32.totalorder %s25_s5, 0 }
   0xf   : > { %p36_p9 = scmp.eq.s32.totalorder %s815_s18, 0  ;;  %p41_p10 = scmp.ne.s32.totalorder %s807_s16, %s803_s15 }
  0x10   : > { %613 = dma.hbm_to_vmem [thread:$0]  (!%p611_p6), %s159_s21, 512, %s161_s25, [#allocation6], %s818_s26, %s818_s26, %s819_s27  }
  0x11   : > { %p128_p11 = scmp.eq.s32.totalorder %s881_s22, 1  ;;  %p913_p12 = por %p42_p1, %p41_p10 }
  0x12   : > { %s909_s6 = scalar_select %p26_p8, %s811_s17, %s28_s30  }
  0x13   : > { %p917_p13 = por %p128_p11, %p35_p7  ;;  %p134_p0 = scmp.eq.s32.totalorder %s582_s28, 1 }
  0x14   : > { %p37_p2 = por %p36_p9, %p35_p7  ;;  %s174_s9 = sand.u32 1, %s811_s17  }
  0x15   : > { %p922_p4 = por %p134_p0, %p41_p10  ;;  %p623_p6 = scmp.lt.s32.totalorder %s815_s18, 2 }
  0x16   : > { %s586_s11 = sshll.u32 %s174_s9, 4  ;;  %s600_s12 = sshll.u32 %s815_s18, 4 }
  0x17   : > { %s183_s19 = scalar_lea.hbm %s1059_s0, %s600_s12  ;;  %s178_s21 = scalar_lea.vmem [#allocation2], %s586_s11 }
  0x18   : > { %s185_s20 = sshll.u32 %s183_s19, 4  ;;  %s187_s24 = sshll.u32 %s178_s21, 4  ;;  %s186_s20 = int_to_ptr.hbm [resolvable:$true] %s185_s20  ;;  %s188_s24 = int_to_ptr.vmem [resolvable:$true] %s187_s24 }
  0x19   : > { %p931_p8 = pnand %p623_p6, %p37_p2  ;;  %s175_s26 = scalar_lea.sflag [#allocation3], %s174_s9 }
  0x1a   : > { %s715_s27 = sshra.s32 %s186_s20, 4  ;;  %s722_s11 = scalar_lea.hbm %s1059_s0, 32  ;;  %s716_s27 = int_to_ptr.hbm [resolvable:$true] %s715_s27 }
  0x1b   : > { %s717_s28 = scalar_lea.hbm %s716_s27, 16  ;;  %p719_p9 = pneg %p931_p8 }
  0x1c   : > { %p718_p7 = scmp.ne.s32.totalorder %s716_s27, %s717_s28  ;;  %p723_p0 = scmp.lt.s32.totalorder %s716_s27, %s1059_s0 }
  0x1d   : > { %p724_p2 = scmp.lt.s32.totalorder %s722_s11, %s717_s28 }
  0x1e   : > { %p720_p10 = pnand %p719_p9, %p718_p7 }
  0x1f   : > { %p725_p6 = por %p724_p2, %p723_p0 }
  0x20   : > { %p721_p11 = pneg %p720_p10 }
  0x22   : > { %p726_p5 = pnand %p725_p6, %p721_p11 }
  0x24   : > { %729 = shalt.err (!%p726_p5)
}
  0x25   : > { %617 = dma.hbm_to_vmem [thread:$0]  (!%p931_p8), %s186_s20, 256, %s188_s24, %s175_s26  }
  0x26   : > { %196 = sbr.rel (%p886_p3) target bundleno = 784 (0x310), region = 36  ;;  %s948_s9 = sand.u32 (!%p886_p3), 1, %s807_s16  }
  0x27   : > { %s590_s14 = sshll.u32 (!%p886_p3), %s948_s9, 4  ;;  %s199_s19 = scalar_lea.sflag (!%p886_p3), [#allocation3], %s948_s9 }
  0x28   : > { %s202_s21 = scalar_lea.vmem (!%p886_p3), [#allocation2], %s590_s14 }
  0x2b   : > { %790 = dma.done.wait (%p913_p12), %s199_s19, 256  }
  0x2c   : > { %792 = vsyncadd (%p913_p12), %s199_s19, 4294967040 }
  0x2d   : > { %794 = dma.done.wait (%p42_p1), [#allocation6], 512  }
  0x2e   : > { %796 = vsyncadd (%p42_p1), [#allocation6], 4294966784  ;;  %v820_v0 = vmov 0   ;;  %v233_v1 = vld [vmem:[%s202_s21] sm:$0xff]  ;;  %v234_v2 = vld [vmem:[%s202_s21 + $0x8] sm:$0xff]  ;;  %v821_v8 = vmov 1   ;;  %v284_v33 = vlaneseq }
  0x2f   : > { %673 = vset.pattern.permute.xlu1 %v820_v0  ;;  %v965_v3 = vld [vmem:[%s1060_s1] sm:$0xff]  ;;  %v236_v4 = vadd.f32 %v234_v2, %v233_v1  ;;  %v239_v5 = vmul.f32 %v233_v1, %v233_v1  ;;  %v240_v6 = vmul.f32 %v234_v2, %v234_v2  ;;  %s822_s7 = smov 112   ;;  %s823_s24 = smov 111   ;;  %v677_v36 = vld [vmem:[#allocation5 + $0x10] ss:$0 sm:$0xff]  ;;  %v994_v45 = vld [vmem:[#allocation5 + $0x8] sm:$0xff] }
  0x30   : > { %265 = vperm.xlu1 %673, %v965_v3   ;;  %s824_s25 = smov 113   ;;  %s825_s26 = smov 1   ;;  %v989_v35 = vand.u32 127, %v284_v33  ;;  %v678_v37 = vld [vmem:[#allocation5 + $0x18] ss:$0 sm:$0xff]  ;;  %v992_v44 = vld [vmem:[#allocation5] sm:$0xff] }
  0x31   : > { %237 = vadd.xlane.f32.xlu0 %v236_v4  ;;  %v241_v7 = vadd.f32 %v240_v6, %v239_v5  ;;  %s826_s27 = smov 127   ;;  %s827_s28 = smov 16   ;;  %v355_v46 = vperm.slane %v992_v44, 7  ;;  %v356_v47 = vperm.slane %v994_v45, 7  ;;  %v344_v55 = vperm.slane %v992_v44, 6 }
  0x32   : > { %s828_s30 = smov 15   ;;  %s829_s5 = smov 17   ;;  %vm363_vm3 = vcmp.lt.s32.totalorder %v989_v35, 111  ;;  %vm352_vm4 = vcmp.lt.s32.totalorder %v989_v35, 112  ;;  %vm341_vm5 = vcmp.lt.s32.totalorder %v989_v35, 113  ;;  %v345_v56 = vperm.slane %v994_v45, 6 }
  0x33   : > { %vm330_vm6 = vcmp.lt.s32.totalorder %v989_v35, 127  ;;  %v333_v0 = vperm.slane %v992_v44, 5  ;;  %vm319_vm7 = vcmp.lt.s32.totalorder %v989_v35, 1  ;;  %vm308_vm8 = vcmp.lt.s32.totalorder %v989_v35, 15  ;;  %s601_s13 = sshll.u32 %s881_s22, 4  ;;  %s232_s22 = scalar_lea.vmem [#allocation7], %s590_s14 }
  0x34   : > { %vm286_vm9 = vcmp.lt.s32.totalorder %v989_v35, 17  ;;  %vm297_vm10 = vcmp.lt.s32.totalorder %v989_v35, 16  ;;  %v370_v35 = vld [vmem:[%s1061_s2] sm:$0xff]  ;;  %vm371_vm11 = vcmask 588800   ;;  %s497_s23 = scalar_lea.hbm %s1063_s4, %s601_s13  ;;  %s499_s20 = sshll.u32 %s232_s22, 4  ;;  %s500_s20 = int_to_ptr.vmem [resolvable:$true] %s499_s20 }
  0x35   : > { %s765_s14 = scalar_lea.hbm %s1063_s4, 32 }
  0x38   : > { %674 = vset.pattern.permute.xlu1 %v821_v8  ;;  %v322_v8 = vperm.slane %v992_v44, 3 }
  0x39   : > { %271 = vperm.xlu1 %674, %v965_v3   ;;  %242 = vadd.xlane.f32.xlu0 %v241_v7 }
  0xa2   : > { %v266_v19 = vpop.permute.xlu1 %265 }
  0xa4   : > { %v238_v9 = vpop.xlane.xlu0 %237 }
  0xa5   : > { %v244_v10 = vmul.f32 0.00390625, %v238_v9  ;;  %v323_v9 = vperm.slane %v994_v45, 3 }
  0xa7   : > { %v246_v12 = vmul.f32 %v244_v10, %v244_v10  ;;  %v248_v23 = vsub.f32 %v233_v1, %v244_v10  ;;  %v249_v24 = vsub.f32 %v234_v2, %v244_v10  ;;  %v334_v1 = vperm.slane %v994_v45, 5 }
  0xab   : > { %v272_v28 = vpop.permute.xlu1 %271 }
  0xac   : > { %v243_v11 = vpop.xlane.xlu0 %242 }
  0xad   : > { %v245_v13 = vmul.f32 0.00390625, %v243_v11 }
  0xaf   : > { %v247_v14 = vsub.f32 %v245_v13, %v246_v12 }
  0xb1   : > { %v250_v15 = vadd.f32 1e-05, %v247_v14 }
  0xb3   : > { %679 = vrsqrt.f32 %v250_v15  ;;  %vm257_vm1 = vweird.f32 %v250_v15 }
  0xb9   : > { %v680_v16 = vpop.eup %679 }
  0xba   : > { %v252_v17 = vmul.f32 %v680_v16, %v250_v15  ;;  %vm258_vm0 = vweird.f32 %v680_v16 }
  0xbb   : > { %vm259_vm2 = vmor %vm257_vm1, %vm258_vm0 }
  0xbc   : > { %v253_v18 = vmul.f32 %v680_v16, %v252_v17  ;;  %v312_v17 = vperm.slane %v994_v45, 2 }
  0xbe   : > { %v254_v20 = vmul.f32 0.5, %v253_v18 }
  0xc0   : > { %v255_v21 = vsub.f32 1.5, %v254_v20 }
  0xc2   : > { %v256_v22 = vmul.f32 %v680_v16, %v255_v21 }
  0xc4   : > { %v260_v25 = vsel %vm259_vm2, %v680_v16, %v256_v22  ;;  %v311_v16 = vperm.slane %v992_v44, 2 }
  0xc5   : > { %v261_v26 = vmul.f32 %v260_v25, %v248_v23  ;;  %v262_v27 = vmul.f32 %v260_v25, %v249_v24  ;;  %v300_v25 = vperm.slane %v992_v44, 1 }
  0xc7   : > { %v268_v29 = vmul.f32 %v266_v19, %v261_v26  ;;  %v269_v30 = vmul.f32 %v266_v19, %v262_v27  ;;  %v301_v26 = vperm.slane %v994_v45, 1 }
  0xc9   : > { %v969_v31 = vadd.f32 %v272_v28, %v268_v29  ;;  %v971_v32 = vadd.f32 %v272_v28, %v269_v30  ;;  %v289_v28 = vperm.slane %v992_v44, 0  ;;  %v290_v29 = vperm.slane %v994_v45, 0 }
  0xcb   : > { %350 = vrot.lane.b32.xlu1 %v971_v32, %s822_s7  ;;  %348 = vrot.lane.b32.xlu0 %v969_v31, %s822_s7  ;;  %s501_s7 = sshll.u32 %s497_s23, 4  ;;  %s502_s7 = int_to_ptr.hbm [resolvable:$true] %s501_s7 }
  0xcc   : > { %359 = vrot.lane.b32.xlu2 %v969_v31, %s823_s24 }
  0xd3   : > { %339 = vrot.lane.b32.xlu1 %v971_v32, %s824_s25  ;;  %317 = vrot.lane.b32.xlu0 %v971_v32, %s825_s26 }
  0xd4   : > { %361 = vrot.lane.b32.xlu2 %v971_v32, %s823_s24  ;;  %s486_s24 = scalar_lea.sflag [#allocation4], %s948_s9 }
  0xdb   : > { %328 = vrot.lane.b32.xlu1 %v971_v32, %s826_s27  ;;  %293 = vrot.lane.b32.xlu0 %v969_v31, %s827_s28 }
  0xdc   : > { %337 = vrot.lane.b32.xlu2 %v969_v31, %s824_s25  ;;  %s759_s25 = sshra.s32 %s502_s7, 4  ;;  %s760_s25 = int_to_ptr.hbm [resolvable:$true] %s759_s25 }
  0xdd   : > { %p766_p12 = scmp.lt.s32.totalorder %s760_s25, %s1063_s4 }
  0xe3   : > { %304 = vrot.lane.b32.xlu1 %v969_v31, %s828_s30  ;;  %282 = vrot.lane.b32.xlu0 %v971_v32, %s829_s5 }
  0xe4   : > { %326 = vrot.lane.b32.xlu2 %v969_v31, %s826_s27 }
  0xeb   : > { %295 = vrot.lane.b32.xlu1 %v971_v32, %s827_s28 }
  0xec   : > { %315 = vrot.lane.b32.xlu2 %v969_v31, %s825_s26  ;;  %s761_s26 = scalar_lea.hbm %s760_s25, 16 }
  0xed   : > { %p762_p1 = scmp.ne.s32.totalorder %s760_s25, %s761_s26  ;;  %p767_p8 = scmp.lt.s32.totalorder %s765_s14, %s761_s26 }
  0xef   : > { %p763_p3 = pnand %p762_p1, %p917_p13  ;;  %p768_p7 = por %p767_p8, %p766_p12 }
  0xf1   : > { %p764_p5 = pneg %p763_p3 }
  0xf3   : > { %p769_p9 = pnand %p768_p7, %p764_p5 }
  0xf4   : > { %306 = vrot.lane.b32.xlu2 %v971_v32, %s828_s30 }
  0xfc   : > { %280 = vrot.lane.b32.xlu2 %v969_v31, %s829_s5 }
 0x126   : > { %v360_v34 = vpop.permute.xlu2 %359 }
 0x12e   : > { %v362_v38 = vpop.permute.xlu2 %361 }
 0x12f   : > { %v364_v39 = vsel %vm363_vm3, %v360_v34, %v362_v38  ;;  %v365_v40 = vsel %vm363_vm3, %v362_v38, %v360_v34 }
 0x130   : > { %v368_v41 = vmul.f32 %v677_v36, %v364_v39  ;;  %v369_v42 = vmul.f32 %v678_v37, %v365_v40 }
 0x132   : > { %382 = vmatpush.msra.mxu0 %v368_v41  ;;  %402 = vmatpush.msra.mxu1 %v369_v42 }
 0x136   : > { %v338_v43 = vpop.permute.xlu2 %337 }
 0x13d   : > { %v351_v48 = vpop.permute.xlu1 %350  ;;  %v349_v49 = vpop.permute.xlu0 %348 }
 0x13e   : > { %v353_v50 = vsel %vm352_vm4, %v349_v49, %v351_v48  ;;  %v354_v51 = vsel %vm352_vm4, %v351_v48, %v349_v49  ;;  %v327_v52 = vpop.permute.xlu2 %326 }
 0x13f   : > { %v357_v53 = vmul.f32 %v355_v46, %v353_v50  ;;  %v358_v54 = vmul.f32 %v356_v47, %v354_v51  ;;  %v830_v51 = vmov 2  }
 0x140   : > { %675 = vset.pattern.permute.xlu1 %v830_v51 }
 0x141   : > { %383 = vmatpush.msra.mxu0 %v357_v53  ;;  %403 = vmatpush.msra.mxu1 %v358_v54 }
 0x145   : > { %v340_v57 = vpop.permute.xlu1 %339  ;;  %v318_v60 = vpop.permute.xlu0 %317 }
 0x146   : > { %v342_v58 = vsel %vm341_vm5, %v338_v43, %v340_v57  ;;  %v343_v59 = vsel %vm341_vm5, %v340_v57, %v338_v43  ;;  %v316_v61 = vpop.permute.xlu2 %315 }
 0x147   : > { %v346_v62 = vmul.f32 %v344_v55, %v342_v58  ;;  %v347_v63 = vmul.f32 %v345_v56, %v343_v59  ;;  %v320_v10 = vsel %vm319_vm7, %v316_v61, %v318_v60  ;;  %v321_v11 = vsel %vm319_vm7, %v318_v60, %v316_v61 }
 0x148   : > { %v324_v14 = vmul.f32 %v322_v8, %v321_v11  ;;  %v325_v15 = vmul.f32 %v323_v9, %v320_v10 }
 0x149   : > { %384 = vmatpush.msra.mxu0 %v346_v62  ;;  %404 = vmatpush.msra.mxu1 %v347_v63 }
 0x14d   : > { %v329_v2 = vpop.permute.xlu1 %328  ;;  %v294_v12 = vpop.permute.xlu0 %293 }
 0x14e   : > { %v331_v4 = vsel %vm330_vm6, %v327_v52, %v329_v2  ;;  %v332_v5 = vsel %vm330_vm6, %v329_v2, %v327_v52  ;;  %v307_v13 = vpop.permute.xlu2 %306  ;;  %v831_v52 = vmov 3  }
 0x14f   : > { %v335_v6 = vmul.f32 %v333_v0, %v331_v4  ;;  %v336_v7 = vmul.f32 %v334_v1, %v332_v5  ;;  %676 = vset.pattern.permute.xlu0 %v831_v52 }
 0x151   : > { %385 = vmatpush.msra.mxu0 %v335_v6  ;;  %405 = vmatpush.msra.mxu1 %v336_v7 }
 0x153   : > { %386 = vmatpush.msra.mxu0 %v969_v31  ;;  %406 = vmatpush.msra.mxu1 %v971_v32 }
 0x155   : > { %v305_v18 = vpop.permute.xlu1 %304  ;;  %387 = vmatpush.msra.mxu0 %v324_v14  ;;  %407 = vmatpush.msra.mxu1 %v325_v15  ;;  %v283_v23 = vpop.permute.xlu0 %282 }
 0x156   : > { %v309_v19 = vsel %vm308_vm8, %v305_v18, %v307_v13  ;;  %v310_v20 = vsel %vm308_vm8, %v307_v13, %v305_v18  ;;  %v281_v24 = vpop.permute.xlu2 %280 }
 0x157   : > { %v313_v21 = vmul.f32 %v311_v16, %v310_v20  ;;  %v314_v22 = vmul.f32 %v312_v17, %v309_v19  ;;  %v287_v30 = vsel %vm286_vm9, %v281_v24, %v283_v23  ;;  %v288_v31 = vsel %vm286_vm9, %v283_v23, %v281_v24 }
 0x158   : > { %v291_v37 = vmul.f32 %v289_v28, %v288_v31  ;;  %v292_v38 = vmul.f32 %v290_v29, %v287_v30 }
 0x159   : > { %388 = vmatpush.msra.mxu0 %v313_v21  ;;  %408 = vmatpush.msra.mxu1 %v314_v22 }
 0x15d   : > { %v296_v27 = vpop.permute.xlu1 %295 }
 0x15e   : > { %v298_v32 = vsel %vm297_vm10, %v294_v12, %v296_v27  ;;  %v299_v33 = vsel %vm297_vm10, %v296_v27, %v294_v12 }
 0x15f   : > { %v302_v34 = vmul.f32 %v300_v25, %v299_v33  ;;  %v303_v36 = vmul.f32 %v301_v26, %v298_v32 }
 0x161   : > { %389 = vmatpush.msra.mxu0 %v302_v34  ;;  %409 = vmatpush.msra.mxu1 %v303_v36 }
 0x163   : > { %390 = vmatpush.msra.mxu0 %v291_v37  ;;  %410 = vmatpush.msra.mxu1 %v292_v38 }
 0x164   : > { %593 = vmatmul.msk.f32.vlgmr.msra.gmra.mxu0 %vm371_vm11, %v370_v35  ;;  %594 = vmatmul.msk.f32.vlgmr.msra.gmra.mxu1 %vm371_vm11, %v370_v35 }
 0x1e1   : > { %v392_v39 = vpop.f32.mrf.mxu0  ;;  %v412_v40 = vpop.f32.mrf.mxu1 }
 0x1e2   : > { %v418_v41 = vmul.f32 %v392_v39, %v392_v39  ;;  %v419_v42 = vmul.f32 %v412_v40, %v412_v40  ;;  %v415_v43 = vadd.f32 %v412_v40, %v392_v39 }
 0x1e4   : > { %416 = vadd.xlane.f32.xlu1 %v415_v43  ;;  %v420_v44 = vadd.f32 %v419_v42, %v418_v41 }
 0x1e6   : > { %421 = vadd.xlane.f32.xlu2 %v420_v44 }
 0x1fd   : > { %472 = vperm.xlu1 %675, %v965_v3  }
 0x257   : > { %v417_v45 = vpop.xlane.xlu1 %416 }
 0x258   : > { %v423_v46 = vmul.f32 0.00390625, %v417_v45 }
 0x259   : > { %v422_v47 = vpop.xlane.xlu2 %421 }
 0x25a   : > { %v424_v48 = vmul.f32 0.00390625, %v422_v47  ;;  %v425_v49 = vmul.f32 %v423_v46, %v423_v46  ;;  %v427_v60 = vsub.f32 %v392_v39, %v423_v46  ;;  %v428_v61 = vsub.f32 %v412_v40, %v423_v46 }
 0x25c   : > { %v426_v50 = vsub.f32 %v424_v48, %v425_v49 }
 0x25e   : > { %v429_v53 = vadd.f32 1e-05, %v426_v50 }
 0x260   : > { %681 = vrsqrt.f32 %v429_v53  ;;  %vm436_vm13 = vweird.f32 %v429_v53 }
 0x266   : > { %v682_v54 = vpop.eup %681 }
 0x267   : > { %v431_v55 = vmul.f32 %v682_v54, %v429_v53  ;;  %vm437_vm12 = vweird.f32 %v682_v54 }
 0x268   : > { %vm438_vm14 = vmor %vm436_vm13, %vm437_vm12 }
 0x269   : > { %v432_v56 = vmul.f32 %v682_v54, %v431_v55 }
 0x26b   : > { %v433_v57 = vmul.f32 0.5, %v432_v56 }
 0x26d   : > { %v434_v58 = vsub.f32 1.5, %v433_v57 }
 0x26f   : > { %v435_v59 = vmul.f32 %v682_v54, %v434_v58  ;;  %v473_v23 = vpop.permute.xlu1 %472 }
 0x271   : > { %v439_v62 = vsel %vm438_vm14, %v682_v54, %v435_v59 }
 0x272   : > { %v440_v63 = vmul.f32 %v439_v62, %v427_v60  ;;  %v441_v0 = vmul.f32 %v439_v62, %v428_v61 }
 0x274   : > { %v442_v1 = vmax.f32 %v440_v63, 0.0  ;;  %v443_v2 = vmax.f32 %v441_v0, 0.0 }
 0x276   : > { %v444_v4 = vadd.f32 %v443_v2, %v442_v1  ;;  %v447_v5 = vmul.f32 %v442_v1, %v442_v1  ;;  %v448_v6 = vmul.f32 %v443_v2, %v443_v2 }
 0x278   : > { %445 = vadd.xlane.f32.xlu0 %v444_v4  ;;  %v449_v7 = vadd.f32 %v448_v6, %v447_v5 }
 0x27a   : > { %450 = vadd.xlane.f32.xlu2 %v449_v7 }
 0x28c   : > { %478 = vperm.xlu0 %676, %v965_v3  }
 0x2eb   : > { %v446_v8 = vpop.xlane.xlu0 %445 }
 0x2ec   : > { %v452_v9 = vmul.f32 0.00390625, %v446_v8 }
 0x2ed   : > { %v451_v10 = vpop.xlane.xlu2 %450 }
 0x2ee   : > { %v453_v11 = vmul.f32 0.00390625, %v451_v10  ;;  %v454_v12 = vmul.f32 %v452_v9, %v452_v9  ;;  %v456_v21 = vsub.f32 %v442_v1, %v452_v9  ;;  %v457_v3 = vsub.f32 %v443_v2, %v452_v9 }
 0x2f0   : > { %v455_v13 = vsub.f32 %v453_v11, %v454_v12 }
 0x2f2   : > { %v458_v14 = vadd.f32 1e-05, %v455_v13 }
 0x2f4   : > { %683 = vrsqrt.f32 %v458_v14  ;;  %vm465_vm0 = vweird.f32 %v458_v14 }
 0x2fa   : > { %v684_v15 = vpop.eup %683 }
 0x2fb   : > { %v460_v16 = vmul.f32 %v684_v15, %v458_v14  ;;  %vm466_vm15 = vweird.f32 %v684_v15 }
 0x2fc   : > { %vm467_vm1 = vmor %vm465_vm0, %vm466_vm15 }
 0x2fd   : > { %v461_v17 = vmul.f32 %v684_v15, %v460_v16 }
 0x2fe   : > { %v479_v26 = vpop.permute.xlu0 %478 }
 0x2ff   : > { %v462_v18 = vmul.f32 0.5, %v461_v17 }
 0x301   : > { %v463_v19 = vsub.f32 1.5, %v462_v18 }
 0x303   : > { %v464_v20 = vmul.f32 %v684_v15, %v463_v19 }
 0x305   : > { %v468_v22 = vsel %vm467_vm1, %v684_v15, %v464_v20 }
 0x306   : > { %v469_v24 = vmul.f32 %v468_v22, %v456_v21  ;;  %v470_v25 = vmul.f32 %v468_v22, %v457_v3 }
 0x308   : > { %v475_v27 = vmul.f32 %v473_v23, %v469_v24  ;;  %v476_v28 = vmul.f32 %v473_v23, %v470_v25 }
 0x30a   : > { %v481_v29 = vadd.f32 %v479_v26, %v475_v27  ;;  %v482_v30 = vadd.f32 %v479_v26, %v476_v28 }
 0x30c   : > { %483 = vst [vmem:[%s232_s22] sm:$0xff] %v481_v29 }
 0x30d   : > { %484 = vst [vmem:[%s232_s22 + $0x8] sm:$0xff] %v482_v30 }
 0x30e   : > { %772 = shalt.err (!%p769_p9)
}
 0x30f   : > { %608 = dma.vmem_to_hbm [thread:$0]  (%p917_p13), %s500_s20, 256, %s502_s7, %s486_s24  }
 0x310 PF: > { %s513_s9 = sand.u32 1, %s803_s15   ;;  %p1069_p10 = scmp.ge.s32.totalorder %s815_s18, 2 }
 0x311   : > { %s514_s11 = scalar_lea.sflag [#allocation4], %s513_s9 }
 0x312   : > { %p619_p11 = pnand %p1069_p10, %p922_p4 }
 0x314   : > { %p620_p0 = pneg %p619_p11 }
 0x316   : > { %798 = dma.done.wait (%p620_p0), %s514_s11, 256  }
 0x317   : > { %800 = vsyncadd (%p620_p0), %s514_s11, 4294967040  ;;  %p18_p2 = scmp.ge.s32.totalorder %s897_s29, 4   ;;  %s1070_s15 = smov %s807_s16 }
 0x318   : > { %s1071_s16 = smov %s811_s17  ;;  %s1072_s17 = smov %s909_s6 }
 0x319   : > { %s1073_s18 = smov %s897_s29  ;;  %20 = sbr.rel (!%p18_p2) target bundleno = 6 (0x6), region = 85 }
 0x31e   :  { %520 = vsyncpa [#allocation3], 1 }
 0x31f   :  { %522 = vsyncpa [#allocation3 + $0x1], 1 }
 0x320   :  { %523 = vsyncpa [#allocation6], 1 }
 0x321   :  { %524 = vsyncpa [#allocation4], 1 }
 0x322   :  { %526 = vsyncpa [#allocation4 + $0x1], 1 }

</bundles_post_ra>
